<compile_context>
chip_gen: v5e
topology: v5e:2x2
jax: 0.10.0
libtpu: 0.0.40
codegen_flags: <defaults>
</compile_context>

<pallas_src>
import math

import jax
import jax.numpy as jnp
from jax.experimental import pallas as pl
from jax.experimental.pallas import tpu as pltpu


_VMEM = pl.BlockSpec(memory_space=pltpu.MemorySpace.VMEM)
_SMEM_OUT = pl.BlockSpec(memory_space=pltpu.MemorySpace.SMEM)

# Per-call VMEM budget: within the default scoped limit on v6e/v7x and well
# under v7x's 64 MiB physical VMEM per TensorCore (review: keep < ~32 MiB live).
_VMEM_LIMIT_BYTES = 32 * 1024 * 1024


def _pick_hw_tile(hw):
    """Largest lane tile (multiple of 128, <= 512) that divides HW; else full HW."""
    for t in (512, 384, 256, 128):
        if hw % t == 0:
            return t
    # TODO(synk): pad HW up to a multiple of 128 for production feature maps whose
    # spatial size is not 128-divisible instead of keeping the full row in one block.
    return hw


# --------------------------- iou (SmoothL1) kernel ---------------------------

def _smooth_l1_sum(a, b):
    d = a - b
    ad = jnp.abs(d)
    return jnp.sum(jnp.where(ad < 1.0, 0.5 * d * d, ad - 0.5))


def _iou_losses_kernel(s_ref, t_ref, g_ref, out_ref):
    """Fused sums: [SL1(student,teacher), SL1(teacher,gt), SL1(student,gt)]."""
    s = s_ref[...].astype(jnp.float32)
    t = t_ref[...].astype(jnp.float32)
    g = g_ref[...].astype(jnp.float32)
    out_ref[0] = _smooth_l1_sum(s, t)
    out_ref[1] = _smooth_l1_sum(t, g)
    out_ref[2] = _smooth_l1_sum(s, g)


def iou_smooth_l1_sums(iou_student, iou_teacher, iou_gt):
    # Inputs are (num_seq, num_proposals) — far below one vreg, so this call is
    # launch-overhead dominated.  Per the review, folding it into plain XLA is
    # equally acceptable; it is kept in Pallas as one fused launch.
    bytes_in = sum(int(x.size * x.dtype.itemsize)
                   for x in (iou_student, iou_teacher, iou_gt))
    return pl.pallas_call(
        _iou_losses_kernel,
        out_shape=jax.ShapeDtypeStruct((3,), jnp.float32),
        in_specs=[_VMEM] * 3,
        out_specs=_SMEM_OUT,
        cost_estimate=pl.CostEstimate(flops=int(12 * iou_student.size),
                                      transcendentals=0,
                                      bytes_accessed=bytes_in + 12),
    )(iou_student, iou_teacher, iou_gt)


def iou_losses(iou_student, iou_teacher, iou_gt, threshold=0.005):
    sums = iou_smooth_l1_sums(iou_student, iou_teacher, iou_gt)
    n = iou_student.size
    loss_ts = sums[0] / n        # SmoothL1Loss(student, teacher), mean
    loss_teacher = sums[1] / n   # SmoothL1Loss(teacher, gt), mean
    loss_student = sums[2] / n   # SmoothL1Loss(student, gt), mean
    gap = loss_teacher - loss_student
    loss_ah = jnp.where(gap < threshold, loss_student, jnp.float32(0.0))
    return loss_ts, loss_ah


# ------------------------------ fidelity kernel ------------------------------

def _fidelity_layer_kernel(w_ref, x_ref, t_ref, acc_ref):
    """One grid step: 1x1 conv (channel contraction on the MXU) for one batch
    element x one HW tile; squared error accumulated element-wise into the
    resident per-batch output block (no per-step cross-lane reduction)."""
    @pl.when(pl.program_id(1) == 0)
    def _init():
        acc_ref[...] = jnp.zeros_like(acc_ref)

    # f32 MXU operands for PyTorch-reference parity. Opt-in perf tradeoffs
    # (review): bf16 MXU inputs with f32 accumulation, or the Gram-identity
    # form sum((wS-T)^2) = <w^T w, S S^T> - 2<w, T S^T> + ||T||^2 so the MXU
    # contraction dim becomes HW instead of the small Cs.
    w = w_ref[...].astype(jnp.float32)       # (Ct, Cs)
    x = x_ref[0].astype(jnp.float32)         # (Cs, tile_hw)
    t = t_ref[0].astype(jnp.float32)         # (Ct, tile_hw)
    d = jnp.dot(w, x, preferred_element_type=jnp.float32) - t
    acc_ref[0] += d * d                      # pure VPU accumulate


def fidelity_loss(ref_feats_s, test_feats_s, ref_feats_t, test_feats_t,
                  target_bb, upsample_filters,
                  match_layers=("layer2", "layer3"), **kwargs):
    num_sequences = target_bb.shape[1]

    def first_image(feat):
        return feat.reshape(-1, num_sequences, *feat.shape[-3:])[0]

    loss = jnp.float32(0.0)
    for layer in match_layers:
        rs = first_image(ref_feats_s[layer])      # (Nr, Cs, H, W)
        rt = first_image(ref_feats_t[layer])      # (Nr, Ct, H, W)
        ts = test_feats_s[layer]                  # (Nt, Cs, H, W)
        tt = test_feats_t[layer]                  # (Nt, Ct, H, W)

        nr, cs, h, w_sp = rs.shape
        nt = ts.shape[0]
        ct = rt.shape[1]
        hw = h * w_sp

        # Free adjacent-minor-dim merges + one-time batch concat so a single
        # contraction per layer covers both the ref and test terms.
        x = jnp.concatenate([rs.reshape(nr, cs, hw), ts.reshape(nt, cs, hw)], axis=0)
        t = jnp.concatenate([rt.reshape(nr, ct, hw), tt.reshape(nt, ct, hw)], axis=0)
        w = upsample_filters[layer][:, :, 0, 0]   # (Ct, Cs)
        nb = nr + nt

        tile = _pick_hw_tile(hw)
        n_tiles = hw // tile
        flops = 2 * nb * ct * cs * hw + 3 * nb * ct * hw
        bytes_acc = 4 * (x.size + t.size + w.size + nb * ct * tile)

        partial = pl.pallas_call(
            _fidelity_layer_kernel,
            out_shape=jax.ShapeDtypeStruct((nb, ct, tile), jnp.float32),
            grid=(nb, n_tiles),
            in_specs=[
                pl.BlockSpec((ct, cs), lambda n, m: (0, 0)),          # weights
                pl.BlockSpec((1, cs, tile), lambda n, m: (n, 0, m)),  # student
                pl.BlockSpec((1, ct, tile), lambda n, m: (n, 0, m)),  # teacher
            ],
            out_specs=pl.BlockSpec((1, ct, tile), lambda n, m: (n, 0, 0)),
            compiler_params=pltpu.CompilerParams(
                dimension_semantics=("parallel", "arbitrary"),
                vmem_limit_bytes=_VMEM_LIMIT_BYTES),
            cost_estimate=pl.CostEstimate(flops=int(flops), transcendentals=0,
                                          bytes_accessed=int(bytes_acc)),
        )(w, x, t)

        # Single tiny cross-lane reduce per layer; ref/test MSE keep their own
        # denominators (correct even when nr != nt).
        per_n = jnp.sum(partial, axis=(1, 2))
        loss = (loss
                + jnp.sum(per_n[:nr]) / (nr * ct * hw)
                + jnp.sum(per_n[nr:]) / (nt * ct * hw))
    return loss


# ------------------------------ tracking kernel ------------------------------

def _tracking_layer_kernel(r_ref, g_ref, acc_ref):
    """One grid step: (response - label)^2 for one sequence x one HW tile.
    Label is broadcast over channels (sublanes) in-kernel; squared error is
    accumulated element-wise into the resident per-sequence output block."""
    @pl.when(pl.program_id(1) == 0)
    def _init():
        acc_ref[...] = jnp.zeros_like(acc_ref)
    r = r_ref[0].astype(jnp.float32)   # (C, tile_hw)
    g = g_ref[0].astype(jnp.float32)   # (1, tile_hw)
    d = r - g                          # sublane broadcast over C
    acc_ref[0] += d * d


def label_function_spatial_batch(feat_sz_hw, sigma, center):
    # TODO(synk): dcf.label_function_spatial_batch source is not in the module;
    # re-derived from pytracking's dcf.label_function_spatial (Gaussian label,
    # origin at feature-map centre: k = arange(sz) - (sz/2 + center)), batched.
    H, W = int(feat_sz_hw[0]), int(feat_sz_hw[1])
    k0 = jnp.arange(H, dtype=jnp.float32)[None, :] - (H / 2.0 + center[:, 0:1])
    k1 = jnp.arange(W, dtype=jnp.float32)[None, :] - (W / 2.0 + center[:, 1:2])
    g0 = jnp.exp(-0.5 * (k0 / sigma[0]) ** 2)
    g1 = jnp.exp(-0.5 * (k1 / sigma[1]) ** 2)
    return (g0[:, :, None] * g1[:, None, :])[:, None, :, :]  # (num_seq, 1, H, W)


def tracking_loss(ref_feats_s, test_feats_s, target_bb, test_bb,
                  match_layers=("layer1", "layer2", "layer3"), **kwargs):
    num_sequences = target_bb.shape[1]
    target_bb0 = target_bb[0]
    test_bb0 = test_bb[0]
    center_ref_orig = target_bb0[:, 0:2] + 0.5 * target_bb0[:, 2:4]
    center_test_orig = test_bb0[:, 0:2] + 0.5 * test_bb0[:, 2:4]

    loss = jnp.float32(0.0)
    for idx, layer in enumerate(match_layers, 5 - len(match_layers)):
        downsample = 0.5 ** idx
        ref_feat = ref_feats_s[layer].reshape(
            -1, num_sequences, *ref_feats_s[layer].shape[-3:])[0]
        test_feat = test_feats_s[layer]
        S, C, H, W = test_feat.shape
        feat_sz = jnp.asarray([H, W], dtype=jnp.float32)
        sigma = 0.25 * feat_sz
        center_ref = center_ref_orig * downsample - 0.5 * feat_sz
        center_test = center_test_orig * downsample - 0.5 * feat_sz
        y = label_function_spatial_batch((H, W), sigma, center_ref)
        g = label_function_spatial_batch((H, W), sigma, center_test)
        # TODO(synk): rfft2/irfft2 and the tightly-coupled complex filter algebra
        # have no Pallas TPU equivalent; they stay in plain JAX (XLA FFT).
        y_hat = jnp.fft.rfft2(y)
        ref_hat = jnp.fft.rfft2(ref_feat)
        test_hat = jnp.fft.rfft2(test_feat)
        top = jnp.conj(y_hat) * ref_hat
        bot = jnp.sum(ref_hat * jnp.conj(ref_hat), axis=1, keepdims=True)
        # torch stores complex as stacked (re, im); `bot + 1e-5` adds the eps to
        # both components before complex.div's true complex division.
        w_hat = top / (bot + (1e-5 + 1e-5j))
        r = jnp.fft.irfft2(jnp.conj(w_hat) * test_hat, s=(H, W))

        # Lane-dense layout: merge H,W into the lane axis (free adjacent merge).
        hw = H * W
        r2 = r.reshape(S, C, hw)
        g2 = g.reshape(S, 1, hw)
        tile = _pick_hw_tile(hw)
        n_tiles = hw // tile
        bytes_acc = 4 * (r2.size + g2.size + S * C * tile)

        partial = pl.pallas_call(
            _tracking_layer_kernel,
            out_shape=jax.ShapeDtypeStruct((S, C, tile), jnp.float32),
            grid=(S, n_tiles),
            in_specs=[pl.BlockSpec((1, C, tile), lambda s, m: (s, 0, m)),
                      pl.BlockSpec((1, 1, tile), lambda s, m: (s, 0, m))],
            out_specs=pl.BlockSpec((1, C, tile), lambda s, m: (s, 0, 0)),
            compiler_params=pltpu.CompilerParams(
                dimension_semantics=("parallel", "arbitrary"),
                vmem_limit_bytes=_VMEM_LIMIT_BYTES),
            cost_estimate=pl.CostEstimate(flops=int(3 * S * C * hw),
                                          transcendentals=0,
                                          bytes_accessed=int(bytes_acc)),
        )(r2, g2)

        loss = loss + jnp.sum(partial) / (S * C * hw)
    return loss


# ------------------------------ composite loss -------------------------------

def compression_loss(iou, features, upsample_filters,
                     w_ts=1.0, w_ah=0.1, w_track=100.0, w_fd=0.01,
                     threshold_ah=0.005):
    loss = jnp.float32(0.0)
    iou_loss = jnp.float32(0.0)
    if w_ts != 0.0 or w_ah != 0.0:
        loss_ts, loss_ah = iou_losses(iou["iou_student"], iou["iou_teacher"],
                                      iou["iou_gt"], threshold=threshold_ah)
        if w_ts != 0.0:
            tmp = w_ts * loss_ts
            loss = loss + tmp
            iou_loss = iou_loss + tmp
        if w_ah != 0.0:
            tmp = w_ah * loss_ah
            loss = loss + tmp
            iou_loss = iou_loss + tmp
    if w_fd != 0.0:
        loss = loss + w_fd * fidelity_loss(upsample_filters=upsample_filters,
                                           **features)
    if w_track != 0.0:
        loss = loss + w_track * tracking_loss(**features)
    return loss, iou_loss


# ------------------------------ parameter init -------------------------------

def xavier_normal(key, out_c, in_c):
    # nn.init.xavier_normal_ on a (out_c, in_c, 1, 1) conv weight.
    std = math.sqrt(2.0 / (in_c + out_c))
    return std * jax.random.normal(key, (out_c, in_c, 1, 1), dtype=jnp.float32)


# ----------------------------------- main ------------------------------------

if __name__ == "__main__":
    key = jax.random.PRNGKey(0)
    keys = jax.random.split(key, 16)
    num_seq = 2

    # iou predictions / gt: (num_sequences, num_proposals)
    iou = {
        "iou_student": jax.random.normal(keys[0], (num_seq, 16), jnp.float32),
        "iou_teacher": jax.random.normal(keys[1], (num_seq, 16), jnp.float32),
        "iou_gt": jax.random.uniform(keys[2], (num_seq, 16), jnp.float32),
    }

    # image size 64 -> layer1 stride 4 (16x16), layer2 stride 8 (8x8),
    # layer3 stride 16 (4x4). Student channels (16/32/64), teacher (128/256)
    # match the fixed 1x1 upsample-filter shapes in FidelityLoss.
    shapes_s = {"layer1": (num_seq, 16, 16, 16),
                "layer2": (num_seq, 32, 8, 8),
                "layer3": (num_seq, 64, 4, 4)}
    shapes_t = {"layer2": (num_seq, 128, 8, 8),
                "layer3": (num_seq, 256, 4, 4)}
    ref_feats_s = {k: jax.random.normal(keys[3 + i], s, jnp.float32)
                   for i, (k, s) in enumerate(shapes_s.items())}
    test_feats_s = {k: jax.random.normal(keys[6 + i], s, jnp.float32)
                    for i, (k, s) in enumerate(shapes_s.items())}
    ref_feats_t = {k: jax.random.normal(keys[9 + i], s, jnp.float32)
                   for i, (k, s) in enumerate(shapes_t.items())}
    test_feats_t = {k: jax.random.normal(keys[11 + i], s, jnp.float32)
                    for i, (k, s) in enumerate(shapes_t.items())}

    # (num_images, num_sequences, 4) boxes in (x, y, w, h) image coordinates.
    target_bb = jnp.array([[[20.0, 18.0, 16.0, 12.0],
                            [30.0, 25.0, 10.0, 14.0]]], jnp.float32)
    test_bb = jnp.array([[[22.0, 20.0, 15.0, 11.0],
                          [28.0, 27.0, 12.0, 13.0]]], jnp.float32)

    features = dict(ref_feats_s=ref_feats_s, test_feats_s=test_feats_s,
                    ref_feats_t=ref_feats_t, test_feats_t=test_feats_t,
                    target_bb=target_bb, test_bb=test_bb)

    upsample_filters = {
        "layer2": xavier_normal(keys[13], 128, 32),
        "layer3": xavier_normal(keys[14], 256, 64),
    }

    loss, iou_loss = compression_loss(iou, features, upsample_filters)
    jax.block_until_ready((loss, iou_loss))
    print("KERNEL_OK")
</pallas_src>

<mosaic_0001>
module attributes {stable_mosaic.version = 11 : i64} {
  func.func @_iou_losses_kernel(%arg0: memref<2x16xf32, #tpu.memory_space<vmem>>, %arg1: memref<2x16xf32, #tpu.memory_space<vmem>>, %arg2: memref<2x16xf32, #tpu.memory_space<vmem>>, %arg3: memref<3xf32, #tpu.memory_space<smem>>) attributes {dimension_semantics = [], scalar_prefetch = 0 : i64, scratch_operands = 0 : i64, tpu.core_type = #tpu.core_type<tc>} {
    %c0 = arith.constant 0 : index
    %c0_0 = arith.constant 0 : index
    %0 = vector.load %arg0[%c0, %c0_0] : memref<2x16xf32, #tpu.memory_space<vmem>>, vector<2x16xf32>
    %c0_1 = arith.constant 0 : index
    %c0_2 = arith.constant 0 : index
    %1 = vector.load %arg1[%c0_1, %c0_2] : memref<2x16xf32, #tpu.memory_space<vmem>>, vector<2x16xf32>
    %c0_3 = arith.constant 0 : index
    %c0_4 = arith.constant 0 : index
    %2 = vector.load %arg2[%c0_3, %c0_4] : memref<2x16xf32, #tpu.memory_space<vmem>>, vector<2x16xf32>
    %3 = arith.subf %0, %1 : vector<2x16xf32>
    %4 = math.absf %3 : vector<2x16xf32>
    %cst = arith.constant 1.000000e+00 : f32
    %5 = vector.broadcast %cst : f32 to vector<2x16xf32>
    %6 = arith.cmpf olt, %4, %5 : vector<2x16xf32>
    %cst_5 = arith.constant 5.000000e-01 : f32
    %7 = vector.broadcast %cst_5 : f32 to vector<2x16xf32>
    %8 = arith.mulf %7, %3 : vector<2x16xf32>
    %9 = arith.mulf %8, %3 : vector<2x16xf32>
    %cst_6 = arith.constant 5.000000e-01 : f32
    %10 = vector.broadcast %cst_6 : f32 to vector<2x16xf32>
    %11 = arith.subf %4, %10 : vector<2x16xf32>
    %12 = arith.select %6, %9, %11 : vector<2x16xi1>, vector<2x16xf32>
    %13 = vector.shape_cast %12 : vector<2x16xf32> to vector<1x2x16xf32>
    %cst_7 = arith.constant dense<0.000000e+00> : vector<1xf32>
    %14 = vector.multi_reduction <add>, %13, %cst_7 [1, 2] : vector<1x2x16xf32> to vector<1xf32>
    %15 = vector.shape_cast %14 : vector<1xf32> to vector<1x1x1xf32>
    %16 = vector.extract %15[0, 0, 0] : f32 from vector<1x1x1xf32>
    %c0_8 = arith.constant 0 : index
    %17 = memref.load %arg3[%c0_8] : memref<3xf32, #tpu.memory_space<smem>>
    memref.store %16, %arg3[%c0_8] : memref<3xf32, #tpu.memory_space<smem>>
    %18 = arith.subf %1, %2 : vector<2x16xf32>
    %19 = math.absf %18 : vector<2x16xf32>
    %cst_9 = arith.constant 1.000000e+00 : f32
    %20 = vector.broadcast %cst_9 : f32 to vector<2x16xf32>
    %21 = arith.cmpf olt, %19, %20 : vector<2x16xf32>
    %cst_10 = arith.constant 5.000000e-01 : f32
    %22 = vector.broadcast %cst_10 : f32 to vector<2x16xf32>
    %23 = arith.mulf %22, %18 : vector<2x16xf32>
    %24 = arith.mulf %23, %18 : vector<2x16xf32>
    %cst_11 = arith.constant 5.000000e-01 : f32
    %25 = vector.broadcast %cst_11 : f32 to vector<2x16xf32>
    %26 = arith.subf %19, %25 : vector<2x16xf32>
    %27 = arith.select %21, %24, %26 : vector<2x16xi1>, vector<2x16xf32>
    %28 = vector.shape_cast %27 : vector<2x16xf32> to vector<1x2x16xf32>
    %cst_12 = arith.constant dense<0.000000e+00> : vector<1xf32>
    %29 = vector.multi_reduction <add>, %28, %cst_12 [1, 2] : vector<1x2x16xf32> to vector<1xf32>
    %30 = vector.shape_cast %29 : vector<1xf32> to vector<1x1x1xf32>
    %31 = vector.extract %30[0, 0, 0] : f32 from vector<1x1x1xf32>
    %c1 = arith.constant 1 : index
    %32 = memref.load %arg3[%c1] : memref<3xf32, #tpu.memory_space<smem>>
    memref.store %31, %arg3[%c1] : memref<3xf32, #tpu.memory_space<smem>>
    %33 = arith.subf %0, %2 : vector<2x16xf32>
    %34 = math.absf %33 : vector<2x16xf32>
    %cst_13 = arith.constant 1.000000e+00 : f32
    %35 = vector.broadcast %cst_13 : f32 to vector<2x16xf32>
    %36 = arith.cmpf olt, %34, %35 : vector<2x16xf32>
    %cst_14 = arith.constant 5.000000e-01 : f32
    %37 = vector.broadcast %cst_14 : f32 to vector<2x16xf32>
    %38 = arith.mulf %37, %33 : vector<2x16xf32>
    %39 = arith.mulf %38, %33 : vector<2x16xf32>
    %cst_15 = arith.constant 5.000000e-01 : f32
    %40 = vector.broadcast %cst_15 : f32 to vector<2x16xf32>
    %41 = arith.subf %34, %40 : vector<2x16xf32>
    %42 = arith.select %36, %39, %41 : vector<2x16xi1>, vector<2x16xf32>
    %43 = vector.shape_cast %42 : vector<2x16xf32> to vector<1x2x16xf32>
    %cst_16 = arith.constant dense<0.000000e+00> : vector<1xf32>
    %44 = vector.multi_reduction <add>, %43, %cst_16 [1, 2] : vector<1x2x16xf32> to vector<1xf32>
    %45 = vector.shape_cast %44 : vector<1xf32> to vector<1x1x1xf32>
    %46 = vector.extract %45[0, 0, 0] : f32 from vector<1x1x1xf32>
    %c2 = arith.constant 2 : index
    %47 = memref.load %arg3[%c2] : memref<3xf32, #tpu.memory_space<smem>>
    memref.store %46, %arg3[%c2] : memref<3xf32, #tpu.memory_space<smem>>
    return
  }
}

</mosaic_0001>

<bundles_post_ra>
// kernel: tpu_custom_call.1
= control target key start
LH: loop header
LB: loop body
LE: loop exit
PB: predicated region body
PF: predicated region fallthrough
CT: control target
= control target key end

     0   :  { %8 = vsyncpa [#allocation3], 0  ;;  %s276_s0 = inlined_call_operand.hbm [shape: f32[2,16], index: 0, kind: input, shape index: {}]   ;;  %s277_s1 = inlined_call_operand.hbm [shape: f32[2,16], index: 1, kind: input, shape index: {}]   ;;  %s278_s2 = inlined_call_operand.hbm [shape: f32[2,16], index: 2, kind: input, shape index: {}]   ;;  %s279_s3 = inlined_call_operand.hbm [shape: f32[3], index: 3, kind: output, shape index: {}]  }
   0x1   :  { %9 = vsyncpa [#allocation6], 0  ;;  %s27_s14 = sshll.u32 %s277_s1, 4  ;;  %s28_s14 = int_to_ptr.hbm [resolvable:$true] %s27_s14 }
   0x2   :  { %10 = vsyncpa [#allocation4], 0  ;;  %s237_s15 = smov [#allocation5]   ;;  %s16_s19 = sshll.u32 %s276_s0, 4  ;;  %s17_s19 = int_to_ptr.hbm [resolvable:$true] %s16_s19 }
   0x3   :  { %s29_s16 = sshll.u32 %s237_s15, 4  ;;  %s238_s20 = smov [#allocation2]   ;;  %s30_s16 = int_to_ptr.vmem [resolvable:$true] %s29_s16 }
   0x4   :  { %32 = dma.hbm_to_vmem [thread:$0]  %s28_s14, 32, %s30_s16, [#allocation6]  }
   0x5   :  { %s18_s21 = sshll.u32 %s238_s20, 4  ;;  %s38_s24 = sshll.u32 %s278_s2, 4  ;;  %s19_s21 = int_to_ptr.vmem [resolvable:$true] %s18_s21  ;;  %s39_s24 = int_to_ptr.hbm [resolvable:$true] %s38_s24 }
   0x6   :  { %21 = dma.hbm_to_vmem [thread:$0]  %s17_s19, 32, %s19_s21, [#allocation3]  }
   0x7   :  { %s239_s1 = smov [#allocation7]  }
   0x8   :  { %s40_s25 = sshll.u32 %s239_s1, 4  ;;  %s41_s25 = int_to_ptr.vmem [resolvable:$true] %s40_s25 }
   0x9   :  { %43 = dma.hbm_to_vmem [thread:$0]  %s39_s24, 32, %s41_s25, [#allocation6]  }
   0xa   :  { %231 = dma.done.wait [#allocation3], 32  }
   0xb   :  { %232 = vsyncadd [#allocation3], 4294967264 }
   0xc   :  { %233 = dma.done.wait [#allocation6], 64  }
   0xd   :  { %234 = vsyncadd [#allocation6], 4294967232  ;;  %v56_v0 = vld [vmem:[#allocation2] sm:$0x3]  ;;  %v57_v1 = vld [vmem:[#allocation5] sm:$0x3] }
   0xe   :  { %v58_v2 = vld [vmem:[#allocation7] sm:$0x3]  ;;  %v59_v3 = vsub.f32 %v56_v0, %v57_v1  ;;  %vm66_vm0 = vcmask 123904   ;;  %s122_s27 = sshll.u32 %s279_s3, 4  ;;  %s240_s30 = smov [#allocation8]   ;;  %s123_s27 = int_to_ptr.hbm [resolvable:$true] %s122_s27 }
   0xf   :  { %v98_v4 = vsub.f32 %v56_v0, %v58_v2  ;;  %v79_v5 = vsub.f32 %v57_v1, %v58_v2 }
  0x10   :  { %v60_v6 = vand.u32 2147483647, %v59_v3  ;;  %v62_v7 = vmul.f32 0.5, %v59_v3 }
  0x11   :  { %v99_v8 = vand.u32 2147483647, %v98_v4  ;;  %v101_v9 = vmul.f32 0.5, %v98_v4  ;;  %v80_v10 = vand.u32 2147483647, %v79_v5  ;;  %v82_v11 = vmul.f32 0.5, %v79_v5 }
  0x12   :  { %vm61_vm1 = vcmp.lt.f32.partialorder %v60_v6, 1.0  ;;  %v63_v12 = vmul.f32 %v62_v7, %v59_v3  ;;  %v134_v13 = vadd.f32 -0.5, %v60_v6 }
  0x13   :  { %vm100_vm2 = vcmp.lt.f32.partialorder %v99_v8, 1.0  ;;  %v102_v14 = vmul.f32 %v101_v9, %v98_v4  ;;  %v136_v15 = vadd.f32 -0.5, %v99_v8  ;;  %v83_v17 = vmul.f32 %v82_v11, %v79_v5 }
  0x14   :  { %v65_v16 = vsel %vm61_vm1, %v63_v12, %v134_v13  ;;  %v135_v18 = vadd.f32 -0.5, %v80_v10  ;;  %vm81_vm3 = vcmp.lt.f32.partialorder %v80_v10, 1.0 }
  0x15   :  { %v67_v19 = vsel %vm66_vm0, %v65_v16, 0.0  ;;  %v104_v20 = vsel %vm100_vm2, %v102_v14, %v136_v15 }
  0x16   :  { %68 = vadd.xlane.f32.xlu0 %v67_v19  ;;  %v105_v21 = vsel %vm66_vm0, %v104_v20, 0.0  ;;  %v85_v22 = vsel %vm81_vm3, %v83_v17, %v135_v18 }
  0x17   :  { %106 = vadd.xlane.f32.xlu1 %v105_v21  ;;  %v86_v23 = vsel %vm66_vm0, %v85_v22, 0.0 }
  0x1e   :  { %87 = vadd.xlane.f32.xlu0 %v86_v23 }
  0x89   :  { %v69_v24 = vpop.xlane.xlu0 %68 }
  0x8a   :  { %v70_v25 = vrot.slane %v69_v24, 4  ;;  %v107_v26 = vpop.xlane.xlu1 %106 }
  0x8b   :  { %v108_v27 = vrot.slane %v107_v26, 4 }
  0x8c   :  { %v71_v28 = vadd.f32 %v70_v25, %v69_v24 }
  0x8d   :  { %v109_v29 = vadd.f32 %v108_v27, %v107_v26 }
  0x8e   :  { %v72_v30 = vrot.slane %v71_v28, 2 }
  0x8f   :  { %v110_v32 = vrot.slane %v109_v29, 2 }
  0x90   :  { %v73_v31 = vadd.f32 %v72_v30, %v71_v28 }
  0x91   :  { %v88_v33 = vpop.xlane.xlu0 %87  ;;  %v111_v38 = vadd.f32 %v110_v32, %v109_v29 }
  0x92   :  { %v89_v34 = vrot.slane %v88_v33, 4  ;;  %v74_v35 = vrot.slane %v73_v31, 1 }
  0x93   :  { %v112_v41 = vrot.slane %v111_v38, 1 }
  0x94   :  { %v90_v36 = vadd.f32 %v89_v34, %v88_v33  ;;  %v75_v37 = vadd.f32 %v74_v35, %v73_v31 }
  0x95   :  { %v113_v44 = vadd.f32 %v112_v41, %v111_v38 }
  0x96   :  { %v91_v39 = vrot.slane %v90_v36, 2  ;;  %137 = vpush %v75_v37 }
  0x98   :  { %v92_v40 = vadd.f32 %v91_v39, %v90_v36 }
  0x9a   :  { %v93_v42 = vrot.slane %v92_v40, 1 }
  0x9c   :  { %v94_v43 = vadd.f32 %v93_v42, %v92_v40 }
  0x9e   :  { %139 = vpush %v94_v43 }
  0x9f   :  { %141 = vpush %v113_v44 }
  0xc7   :  { %s138_s0 = spop %137 }
  0xc8   :  { %78 = sst [smem:[#allocation8]] %s138_s0 }
  0xcf   :  { %s140_s28 = spop %139 }
  0xd0   :  { %97 = sst [smem:[#allocation8 + $0x1]] %s140_s28  ;;  %s142_s29 = spop %141 }
  0xd1   :  { %116 = sst [smem:[#allocation8 + $0x2]] %s142_s29 }
  0xd2   :  { %125 = dma.smem_to_hbm %s240_s30, 16, %s123_s27, [#allocation4]  }
  0xd3   :  { %235 = dma.done.wait [#allocation4], 16  }
  0xd4   :  { %236 = vsyncadd [#allocation4], 4294967280 }
  0xd5   :  { %130 = sfence }
  0xd6   :  { %131 = vsyncpa [#allocation3], 1 }
  0xd7   :  { %132 = vsyncpa [#allocation6], 1 }
  0xd8   :  { %133 = vsyncpa [#allocation4], 1 }

</bundles_post_ra>
